<compile_context>
chip_gen: v7x
topology: tpu7x:2x2x1
jax: 0.10.0
libtpu: 0.0.40
codegen_flags: <defaults>
</compile_context>

<pallas_src>
import jax
import jax.numpy as jnp
import numpy as np
from jax.experimental import pallas as pl
from jax.experimental.pallas import tpu as pltpu


_TARGET_BLOCK_BYTES = 4 << 20   # ~4 MiB data blocks amortize ~0.35 us/step overhead


# ---------------------------------------------------------------------------
# Kernels
# ---------------------------------------------------------------------------
def _se_dw_kernel(w_ref, x_ref, o_ref):
    # w_ref: (C, 1) per-channel scale.  x_ref / o_ref: (TB, C, TILE_HW).
    # (C, 1) broadcasts against (TB, C, TILE_HW) -> pure VPU elementwise.
    o_ref[...] = (w_ref[...] * x_ref[...]).astype(o_ref.dtype)


def _se_dense_kernel(w_ref, x_ref, o_ref):
    # w_ref: (TILE_CO, C).  x_ref: (TB, C, TILE_HW).  o_ref: (TB, TILE_CO, TILE_HW).
    # TB is a small static constant -> unrolled MXU matmuls, f32 accumulation.
    w = w_ref[...]
    for b in range(x_ref.shape[0]):
        o_ref[b] = jnp.dot(
            w, x_ref[b], preferred_element_type=jnp.float32
        ).astype(o_ref.dtype)


# ---------------------------------------------------------------------------
# Byte-aware tiling helpers
# ---------------------------------------------------------------------------
def _vmem_limit_bytes():
    """Scoped-VMEM limit to request: generous on v5e/v6e (128 MiB physical),
    conservative on v7x (64 MiB physical per TensorCore)."""
    cap = 64 << 20                      # conservative fallback = v7x physical
    try:
        cap = int(pltpu.get_tpu_info().vmem_capacity_bytes)
    except Exception:
        pass
    return min(max(32 << 20, cap - (16 << 20)), 100 << 20)


def _pick_tile_co(c, dtype_bytes, budget):
    """C_out tile for the dense weight: full C unless the (C, C) matrix is too
    big for the VMEM budget, in which case pick a multiple-of-8 divisor of C."""
    w_cap = min(_TARGET_BLOCK_BYTES, budget // 4)
    if c * c * dtype_bytes <= w_cap or c % 8 != 0:
        return c
    tile = c
    while tile > 8 and (c % tile != 0 or tile * c * dtype_bytes > w_cap):
        tile -= 8
    return tile if c % tile == 0 else c


def _choose_tiling(n, c, hw, dtype_bytes, w_bytes, budget, max_tb):
    """Pick (TB, tile_hw): a lane-dense (multiple-of-128) HW tile plus a batch
    block so one (TB, C, tile_hw) block is ~_TARGET_BLOCK_BYTES, with the
    double-buffered in+out blocks + weight fitting `budget`."""
    max_block = max(128 * c * dtype_bytes,
                    min(_TARGET_BLOCK_BYTES, (budget - 2 * w_bytes) // 4))
    row_bytes = c * dtype_bytes
    if hw <= 128:
        tile_hw = hw                      # full extent (e.g. 7x7 feature maps)
    else:
        lanes = max(128, min(max_block // row_bytes, hw) // 128 * 128)
        if hw % 128 == 0:
            # prefer an exact divisor so no block is ragged / masked
            while lanes > 128 and hw % lanes != 0:
                lanes -= 128
        tile_hw = int(lanes)
    block_bytes = row_bytes * tile_hw
    tb = int(max(1, min(n, max_tb, max_block // max(block_bytes, 1))))
    return tb, tile_hw


# ---------------------------------------------------------------------------
# Wrapper
# ---------------------------------------------------------------------------
def se_module(x, conv_weight, dw_conv):
    """x: (N, C, H, W) NCHW, like PyTorch.

    conv_weight: PyTorch Conv2d weight —
      (C, 1, 1, 1) when dw_conv=True, (C, C, 1, 1) when dw_conv=False.
    Pass bf16 x for bf16 I/O (weight is cast to x.dtype); the dense path
    always accumulates in f32.
    """
    n, c, h, w = x.shape
    hw = h * w
    dtype_bytes = jnp.dtype(x.dtype).itemsize

    vmem_limit = _vmem_limit_bytes()
    budget = (vmem_limit * 3) // 4        # leave headroom for compiler scratch

    if dw_conv:
        w2 = conv_weight.reshape(c, 1).astype(x.dtype)
        tile_co = c
        w_bytes = c * 128 * dtype_bytes   # (C, 1) block pads to 128 lanes in VMEM
        kernel = _se_dw_kernel
        w_spec = pl.BlockSpec((c, 1), lambda i, j, k: (0, 0))
        max_tb = 128
    else:
        w2 = conv_weight.reshape(c, c).astype(x.dtype)
        tile_co = _pick_tile_co(c, dtype_bytes, budget)
        w_bytes = tile_co * c * dtype_bytes
        kernel = _se_dense_kernel
        w_spec = pl.BlockSpec((tile_co, c), lambda i, j, k: (k, 0))
        max_tb = 8                        # dense kernel unrolls over TB

    tb, tile_hw = _choose_tiling(n, c, hw, dtype_bytes, w_bytes, budget, max_tb)

    x3 = x.reshape(n, c, hw)
    # C_out axis last (varies fastest) so the big x block is reused across it.
    grid = (pl.cdiv(n, tb), pl.cdiv(hw, tile_hw), pl.cdiv(c, tile_co))

    x_spec = pl.BlockSpec((tb, c, tile_hw), lambda i, j, k: (i, 0, j))
    if dw_conv:
        o_spec = pl.BlockSpec((tb, c, tile_hw), lambda i, j, k: (i, 0, j))
    else:
        o_spec = pl.BlockSpec((tb, tile_co, tile_hw), lambda i, j, k: (i, k, j))

    out3 = pl.pallas_call(
        kernel,
        out_shape=jax.ShapeDtypeStruct((n, c, hw), x.dtype),
        grid_spec=pltpu.PrefetchScalarGridSpec(
            num_scalar_prefetch=0,
            grid=grid,
            in_specs=[w_spec, x_spec],
            out_specs=o_spec,
        ),
        compiler_params=pltpu.CompilerParams(
            dimension_semantics=("parallel", "parallel", "parallel"),
            vmem_limit_bytes=vmem_limit,
        ),
    )(w2, x3)

    return out3.reshape(n, c, h, w)


def se_module_reference(x, conv_weight, dw_conv):
    """Pure-JAX reference mirroring the PyTorch forward (f32 math)."""
    n, c, h, w = x.shape
    if dw_conv:
        scale = conv_weight.reshape(1, c, 1, 1)
        return scale * x
    wmat = conv_weight.reshape(c, c)
    return jnp.einsum("oi,nihw->nohw", wmat, x)


if __name__ == "__main__":
    batch = 2
    channels = 4
    height = width = 16

    key = jax.random.PRNGKey(0)
    kx, kw_dw, kw_dn, kx7 = jax.random.split(key, 4)
    x = jax.random.normal(kx, (batch, channels, height, width),
                          dtype=jnp.float32)

    # dw_conv=True: Conv2d(C, C, 1, groups=C, bias=False), weight (C, 1, 1, 1)
    w_dw = jax.random.normal(kw_dw, (channels, 1, 1, 1), dtype=jnp.float32)
    out_dw = jax.block_until_ready(se_module(x, w_dw, dw_conv=True))
    ref_dw = se_module_reference(x, w_dw, dw_conv=True)
    np.testing.assert_allclose(np.asarray(out_dw), np.asarray(ref_dw),
                               rtol=1e-5, atol=1e-5)

    # dw_conv=False: Conv2d(C, C, 1, groups=1, bias=False), weight (C, C, 1, 1)
    w_dn = jax.random.normal(kw_dn, (channels, channels, 1, 1),
                             dtype=jnp.float32)
    out_dn = jax.block_until_ready(se_module(x, w_dn, dw_conv=False))
    ref_dn = se_module_reference(x, w_dn, dw_conv=False)
    np.testing.assert_allclose(np.asarray(out_dn), np.asarray(ref_dn),
                               rtol=1e-5, atol=1e-5)

    # bf16 I/O on the dense path (bf16 MXU operands, f32 accumulation).
    x_bf16 = x.astype(jnp.bfloat16)
    out_bf16 = jax.block_until_ready(se_module(x_bf16, w_dn, dw_conv=False))
    ref_bf16 = se_module_reference(x_bf16.astype(jnp.float32), w_dn,
                                   dw_conv=False)
    np.testing.assert_allclose(np.asarray(out_bf16, dtype=np.float32),
                               np.asarray(ref_bf16), rtol=5e-2, atol=5e-2)

    # Non-128-multiple spatial extent (7x7) exercises the full-extent HW path.
    x7 = jax.random.normal(kx7, (batch, channels, 7, 7), dtype=jnp.float32)
    out7 = jax.block_until_ready(se_module(x7, w_dw, dw_conv=True))
    ref7 = se_module_reference(x7, w_dw, dw_conv=True)
    np.testing.assert_allclose(np.asarray(out7), np.asarray(ref7),
                               rtol=1e-5, atol=1e-5)

    print("KERNEL_OK")
</pallas_src>

<mosaic_0001>
module attributes {stable_mosaic.version = 11 : i64} {
  func.func @_se_dw_kernel(%arg0: i32, %arg1: i32, %arg2: i32, %arg3: memref<4x1xf32, #tpu.memory_space<vmem>>, %arg4: memref<2x4x256xf32, #tpu.memory_space<vmem>>, %arg5: memref<2x4x256xf32, #tpu.memory_space<vmem>>) attributes {dimension_semantics = [#tpu.dimension_semantics<parallel>, #tpu.dimension_semantics<parallel>, #tpu.dimension_semantics<parallel>], iteration_bounds = array<i64: 1, 1, 1>, scalar_prefetch = 0 : i64, scratch_operands = 0 : i64, tpu.core_type = #tpu.core_type<tc>, window_params = [{pipeline_mode = #tpu.pipeline_mode<synchronous>, transform_indices = @transform_0, window_bounds = array<i64: 4, 1>}, {transform_indices = @transform_1, window_bounds = array<i64: 2, 4, 256>}, {transform_indices = @transform_2, window_bounds = array<i64: 2, 4, 256>}]} {
    %c0 = arith.constant 0 : index
    %c0_0 = arith.constant 0 : index
    %0 = vector.load %arg3[%c0, %c0_0] : memref<4x1xf32, #tpu.memory_space<vmem>>, vector<4x1xf32>
    %c0_1 = arith.constant 0 : index
    %c0_2 = arith.constant 0 : index
    %c0_3 = arith.constant 0 : index
    %1 = vector.load %arg4[%c0_1, %c0_2, %c0_3] : memref<2x4x256xf32, #tpu.memory_space<vmem>>, vector<2x4x256xf32>
    %2 = vector.shape_cast %0 : vector<4x1xf32> to vector<1x4x1xf32>
    %3 = vector.broadcast %2 : vector<1x4x1xf32> to vector<2x4x256xf32>
    %4 = arith.mulf %3, %1 : vector<2x4x256xf32>
    %c0_4 = arith.constant 0 : index
    %c0_5 = arith.constant 0 : index
    %c0_6 = arith.constant 0 : index
    %5 = vector.load %arg5[%c0_4, %c0_5, %c0_6] : memref<2x4x256xf32, #tpu.memory_space<vmem>>, vector<2x4x256xf32>
    tpu.vector_store %arg5[%c0_4, %c0_5, %c0_6], %4 {strides = array<i32>} : memref<2x4x256xf32, #tpu.memory_space<vmem>>, vector<2x4x256xf32>,
    return
  }
  func.func @transform_0(%arg0: i32, %arg1: i32, %arg2: i32) -> (i32, i32) {
    %c0_i32 = arith.constant 0 : i32
    %c0_i32_0 = arith.constant 0 : i32
    %c0_i32_1 = arith.constant 0 : i32
    return %c0_i32, %c0_i32_0 : i32, i32
  }
  func.func @transform_1(%arg0: i32, %arg1: i32, %arg2: i32) -> (i32, i32, i32) {
    %c0_i32 = arith.constant 0 : i32
    %c0_i32_0 = arith.constant 0 : i32
    return %arg0, %c0_i32, %arg1 : i32, i32, i32
  }
  func.func @transform_2(%arg0: i32, %arg1: i32, %arg2: i32) -> (i32, i32, i32) {
    %c0_i32 = arith.constant 0 : i32
    %c0_i32_0 = arith.constant 0 : i32
    return %arg0, %c0_i32, %arg1 : i32, i32, i32
  }
}

</mosaic_0001>

<bundles_post_ra>
// kernel: tpu_custom_call.1
= control target key start
LH: loop header
LB: loop body
LE: loop exit
PB: predicated region body
PF: predicated region fallthrough
CT: control target
= control target key end

     0   :  { %7 = vsyncpa [#allocation3], 0  ;;  %s180_s0 = inlined_call_operand.vmem [shape: f32[4,1], index: 0, kind: input, shape index: {}]   ;;  %s181_s1 = inlined_call_operand.hbm [shape: f32[2,4,256], index: 1, kind: input, shape index: {}]   ;;  %s182_s2 = inlined_call_operand.hbm [shape: f32[2,4,256], index: 2, kind: output, shape index: {}]  }
   0x1   :  { %8 = vsyncpa [#allocation4], 0  ;;  %s127_s9 = smov [#allocation2]   ;;  %s79_s13 = scalar_lea.hbm %s181_s1, 256 }
   0x2   :  { %s16_s10 = sshll.u32 %s127_s9, 4  ;;  %p80_p0 = scmp.ne.s32.totalorder %s181_s1, %s79_s13  ;;  %s17_s10 = int_to_ptr.vmem [resolvable:$true] %s16_s10 }
   0x3   :  { %p83_p1 = scmp.lt.u32.totalorder %s79_s13, %s181_s1 }
   0x5   :  { %p85_p2 = pnand %p83_p1, %p80_p0 }
   0x7   :  { %88 = shalt.err (!%p85_p2)
}
   0x8   :  { %s89_s18 = scalar_lea.vmem %s17_s10, 256  ;;  %p94_p4 = scmp.lt.s32.totalorder %s17_s10, %s17_s10 }
   0x9   :  { %p90_p3 = scmp.ne.s32.totalorder %s17_s10, %s89_s18  ;;  %p95_p5 = scmp.lt.s32.totalorder %s89_s18, %s89_s18 }
   0xb   :  { %p96_p6 = por %p95_p5, %p94_p4 }
   0xd   :  { %p97_p7 = pnand %p96_p6, %p90_p3 }
   0xf   :  { %100 = shalt.err (!%p97_p7)
}
  0x10   :  { %s128_s19 = smov 128   ;;  %s129_s20 = smov 8  }
  0x11   :  { %22 = dma.hbm_to_vmem [thread:$0]  %s181_s1, 256, %s17_s10, [#allocation3], %s128_s19, %s128_s19, %s129_s20  }
  0x12   :  { %123 = dma.done.wait [#allocation3], 256  }
  0x13   :  { %124 = vsyncadd [#allocation3], 4294967040  ;;  %v130_v0 = vmov 0   ;;  %v26_v1 = vld [vmem:[%s180_s0] sm:$0xf]  ;;  %v28_v3 = vld [vmem:[#allocation2 + $0x8] sm:$0xff] }
  0x14   :  { %76 = vset.pattern.permute.xlu0 %v130_v0  ;;  %v27_v2 = vld [vmem:[#allocation2] sm:$0xff]  ;;  %v37_v5 = vcombine.high %v28_v3, %v28_v3  ;;  %s131_s25 = smov [#allocation5]  }
  0x15   :  { %31 = vperm.xlu0 %76, %v26_v1   ;;  %v36_v4 = vcombine.high %v27_v2, %v27_v2  ;;  %s59_s26 = sshll.u32 %s131_s25, 4  ;;  %s60_s26 = int_to_ptr.vmem [resolvable:$true] %s59_s26 }
  0x16   :  { %s101_s1 = scalar_lea.vmem %s60_s26, 256  ;;  %p106_p9 = scmp.lt.s32.totalorder %s60_s26, %s60_s26 }
  0x17   :  { %p102_p8 = scmp.ne.s32.totalorder %s60_s26, %s101_s1  ;;  %p107_p10 = scmp.lt.s32.totalorder %s101_s1, %s101_s1 }
  0x19   :  { %p108_p11 = por %p107_p10, %p106_p9 }
  0x1b   :  { %p109_p12 = pnand %p108_p11, %p102_p8 }
  0x94   :  { %v32_v6 = vpop.permute.xlu0 %31 }
  0x95   :  { %v40_v7 = vmul.f32 %v32_v6, %v27_v2  ;;  %v41_v8 = vmul.f32 %v36_v4, %v32_v6  ;;  %v42_v9 = vmul.f32 %v32_v6, %v28_v3  ;;  %v43_v10 = vmul.f32 %v37_v5, %v32_v6 }
  0x97   :  { %v48_v11 = vcombine.low %v40_v7, %v41_v8  ;;  %v49_v12 = vcombine.low %v42_v9, %v43_v10 }
  0x99   :  { %52 = vst [vmem:[#allocation5] sm:$0xff] %v48_v11  ;;  %53 = vst [vmem:[#allocation5 + $0x8] sm:$0xff] %v49_v12 }
  0x9a   :  { %112 = shalt.err (!%p109_p12)
}
  0x9b   :  { %s113_s28 = scalar_lea.hbm %s182_s2, 256 }
  0x9c   :  { %p114_p13 = scmp.ne.s32.totalorder %s182_s2, %s113_s28  ;;  %p117_p0 = scmp.lt.u32.totalorder %s113_s28, %s182_s2 }
  0x9e   :  { %p119_p1 = pnand %p117_p0, %p114_p13 }
  0xa0   :  { %122 = shalt.err (!%p119_p1)
}
  0xa1   :  { %65 = dma.vmem_to_hbm [thread:$0]  %s60_s26, 256, %s182_s2, [#allocation4], %s128_s19, %s128_s19, %s129_s20  }
  0xa2   :  { %125 = dma.done.wait [#allocation4], 256  }
  0xa3   :  { %126 = vsyncadd [#allocation4], 4294967040 }
  0xa4   :  { %69 = vsyncpa [#allocation3], 1 }
  0xa5   :  { %70 = vsyncpa [#allocation4], 1 }

</bundles_post_ra>
